<compile_context>
chip_gen: v7x
topology: tpu7x:2x2x1
jax: 0.10.0
libtpu: 0.0.40
codegen_flags: <defaults>
</compile_context>

<pallas_src>
import functools

import jax
import jax.numpy as jnp
import numpy as np
from jax import lax
from jax.experimental import pallas as pl
from jax.experimental.pallas import tpu as pltpu


# --------------------------------------------------------------------------- #
# Kernel: per (batch, packed-pixel-tile) step; SSE accumulated in VMEM scratch.
# --------------------------------------------------------------------------- #
def _r2rei_kernel(y_ref, p_ref, e1_ref, e2_ref, wr_ref, wu_ref, we_ref,
                  out_ref, r2r_acc, ei_acc, *, sigma, alpha):
    j = pl.program_id(1)

    y = y_ref[0]                                    # (2*Cm, TQ)
    pr = p_ref[0]
    e1 = e1_ref[0]
    e2 = e2_ref[0]

    # ---------------- R2R branch (eta = sigma) ------------------------------ #
    # diff = kron(A@M, I2) @ (y + a*s*pert) - (y - (s/a)*pert)
    u1 = y + (alpha * sigma) * pr
    v1 = y - (sigma / alpha) * pr
    d_r2r = jnp.dot(wr_ref[...], u1, preferred_element_type=jnp.float32) - v1

    # ---------------- EI branch (T folded into the weight via S2) ----------- #
    # diff = kron((M@A - I)@M, S2) @ (y + 0.5*s*e1) + 1.5*s*kron(M, I2) @ e2
    u2 = y + (0.5 * sigma) * e1
    d_ei = (jnp.dot(wu_ref[...], u2, preferred_element_type=jnp.float32)
            + jnp.dot(we_ref[...], e2, preferred_element_type=jnp.float32))

    # ---------------- Accumulate squared errors across pixel tiles ---------- #
    @pl.when(j == 0)
    def _():
        r2r_acc[...] = jnp.zeros_like(r2r_acc)
        ei_acc[...] = jnp.zeros_like(ei_acc)

    r2r_acc[...] += d_r2r * d_r2r                   # (2*Cm, TQ), pure VPU adds
    ei_acc[...] += d_ei * d_ei                      # (2*Cx, TQ)

    # One lane-dense (8,128) tile written per batch: row 0 = r2r SSE, row 1 = ei SSE.
    @pl.when(j == pl.num_programs(1) - 1)
    def _():
        r2r_s = jnp.sum(r2r_acc[...])
        ei_s = jnp.sum(ei_acc[...])
        out_ref[0] = jnp.concatenate(
            [jnp.full((1, 128), r2r_s, jnp.float32),
             jnp.full((1, 128), ei_s, jnp.float32),
             jnp.zeros((6, 128), jnp.float32)], axis=0)


# --------------------------------------------------------------------------- #
# Wrapper: packed reshape, fused weight precompute, tiling, pallas_call, reduce.
# --------------------------------------------------------------------------- #
def r2rei_loss(y_nchw, pert, eps1, eps2, A, M, *, sigma, alpha=0.5,
               tile_q_target=16384):
    B, Cm, H, W = y_nchw.shape
    Cx = M.shape[0]
    P = H * W
    assert M.shape == (Cx, Cm) and A.shape == (Cm, Cx)
    # Half-image packing needs P/2 to be a whole number of 128-lane tiles.
    assert P % 256 == 0, "H*W must be a multiple of 256"
    Ph = P // 2

    # Sublane-dense packing: (B, Cm, H, W) -> (B, 2*Cm, P//2).  Free reshape.
    def pack(t):
        return t.reshape(B, 2 * Cm, Ph)

    yr, pr, e1r, e2r = map(pack, (y_nchw, pert, eps1, eps2))

    # Packed-pixel tile: largest 128-multiple divisor of P//2, capped at target.
    tq = 128
    while tq * 2 <= min(tile_q_target, Ph) and Ph % (tq * 2) == 0:
        tq *= 2
    num_q = Ph // tq

    # ---- Host-side fused weights (f32, HIGHEST) ----------------------------- #
    hp = lax.Precision.HIGHEST
    I2 = jnp.eye(2, dtype=jnp.float32)
    S2 = jnp.array([[0.0, 1.0], [1.0, 0.0]], dtype=jnp.float32)
    AM = jnp.dot(A, M, precision=hp)                                  # (Cm, Cm)
    G = jnp.dot(jnp.dot(M, A, precision=hp) - jnp.eye(Cx, dtype=jnp.float32),
                M, precision=hp)                                      # (Cx, Cm)
    w_r2r = jnp.kron(AM, I2).astype(jnp.float32)                      # (2Cm, 2Cm)
    w_ei_u = jnp.kron(G, S2).astype(jnp.float32)                      # (2Cx, 2Cm)  (T folded in)
    w_ei_e2 = (1.5 * sigma) * jnp.kron(M, I2).astype(jnp.float32)     # (2Cx, 2Cm)

    kernel = functools.partial(_r2rei_kernel, sigma=float(sigma), alpha=float(alpha))

    stream = lambda: pl.BlockSpec((1, 2 * Cm, tq), lambda b, j: (b, 0, j))
    const = lambda shape: pl.BlockSpec(shape, lambda b, j: (0, 0))

    # Explicit VMEM limit (review): enough for big double-buffered streams on
    # v5e (16 MiB scoped default) / v6e (32 MiB), capped at 48 MiB for v7x (64 MiB phys).
    blk_bytes = 2 * Cm * tq * 4
    est_vmem = 4 * 2 * blk_bytes + (2 * Cm + 2 * Cx) * tq * 4 + 8 * blk_bytes
    vmem_limit = int(min(48 * 1024 * 1024, max(32 * 1024 * 1024, 2 * est_vmem)))

    flops = int(B * Ph * (2 * (2 * Cm) * (2 * Cm) + 4 * (2 * Cx) * (2 * Cm)
                          + 10 * (2 * Cm) + 4 * (2 * Cx)))
    bytes_accessed = int(4 * B * (2 * Cm) * Ph * 4 + B * 8 * 128 * 4
                         + 4 * ((2 * Cm) ** 2 + 2 * (2 * Cx) * (2 * Cm)))

    partials = pl.pallas_call(
        kernel,
        out_shape=jax.ShapeDtypeStruct((B, 8, 128), jnp.float32),
        grid_spec=pltpu.PrefetchScalarGridSpec(
            num_scalar_prefetch=0,
            grid=(B, num_q),
            in_specs=[
                stream(),                          # y
                stream(),                          # pert
                stream(),                          # eps1
                stream(),                          # eps2 (no shift: T folded into weight)
                const((2 * Cm, 2 * Cm)),           # kron(A@M, I2)        (resident)
                const((2 * Cx, 2 * Cm)),           # kron((M@A-I)@M, S2)  (resident)
                const((2 * Cx, 2 * Cm)),           # 1.5*sigma*kron(M,I2) (resident)
            ],
            out_specs=pl.BlockSpec((1, 8, 128), lambda b, j: (b, 0, 0)),
            scratch_shapes=[pltpu.VMEM((2 * Cm, tq), jnp.float32),   # r2r SSE acc
                            pltpu.VMEM((2 * Cx, tq), jnp.float32)],  # ei  SSE acc
        ),
        compiler_params=pltpu.CompilerParams(
            # Batch axis parallel (megacore on v7x); pixel-tile axis is a reduction
            # into the scratch accumulators -> arbitrary.
            dimension_semantics=("parallel", "arbitrary"),
            vmem_limit_bytes=vmem_limit),
        cost_estimate=pl.CostEstimate(
            flops=flops, transcendentals=0, bytes_accessed=bytes_accessed),
    )(yr, pr, e1r, e2r, w_r2r, w_ei_u, w_ei_e2)

    r2r = jnp.sum(partials[:, 0, 0]) / (B * Cm * P)
    ei = jnp.sum(partials[:, 1, 0]) / (B * Cx * P)
    return r2r + ei


# --------------------------------------------------------------------------- #
# Pure-JAX reference (same synthetic physics / model / transform).
# --------------------------------------------------------------------------- #
def r2rei_loss_reference(y_nchw, pert, eps1, eps2, A, M, *, sigma, alpha=0.5):
    hp = lax.Precision.HIGHEST
    B, Cm, H, W = y_nchw.shape
    P = H * W

    def to3(t):
        return t.reshape(t.shape[0], t.shape[1], P)

    y, p, e1, e2 = map(to3, (y_nchw, pert, eps1, eps2))

    model = lambda z: jnp.einsum('xc,bcp->bxp', M, z, precision=hp)   # model(y)
    A_op = lambda z: jnp.einsum('mx,bxp->bmp', A, z, precision=hp)    # physics.A
    T = lambda z: jnp.roll(z, P // 2, axis=2)                         # cyclic pixel shift

    # R2R
    pert2 = p * sigma
    y_plus = y + pert2 * alpha
    y_minus = y - pert2 / alpha
    x_hat = model(y_plus)
    r2r = jnp.mean((A_op(x_hat) - y_minus) ** 2)

    # EI
    e1s = 0.5 * sigma * e1
    x1 = model(y + e1s)
    x2 = T(x1)
    y2 = A_op(x2)
    e2s = 1.5 * sigma * e2
    x3 = model(y2 + e2s)
    ei = jnp.mean((x3 - x2) ** 2)

    return r2r + ei


if __name__ == "__main__":
    # Small shapes: batch=2, measurement channels=4, image channels=8, 16x16.
    B, Cm, Cx, H, W = 2, 4, 8, 16, 16
    SIGMA = 0.1

    key = jax.random.PRNGKey(0)
    k_y, k_p, k_e1, k_e2, k_a, k_m = jax.random.split(key, 6)

    y = jax.random.normal(k_y, (B, Cm, H, W), dtype=jnp.float32)
    # Noise tensors standing in for torch.randn_like(...)
    pert = jax.random.normal(k_p, (B, Cm, H, W), dtype=jnp.float32)
    eps1 = jax.random.normal(k_e1, (B, Cm, H, W), dtype=jnp.float32)
    eps2 = jax.random.normal(k_e2, (B, Cm, H, W), dtype=jnp.float32)

    # Deterministic synthetic operator weights.
    A = jax.random.normal(k_a, (Cm, Cx), dtype=jnp.float32) / jnp.sqrt(Cx)
    M = jax.random.normal(k_m, (Cx, Cm), dtype=jnp.float32) / jnp.sqrt(Cm)

    loss = r2rei_loss(y, pert, eps1, eps2, A, M, sigma=SIGMA)
    loss = jax.block_until_ready(loss)

    ref = r2rei_loss_reference(y, pert, eps1, eps2, A, M, sigma=SIGMA)
    np.testing.assert_allclose(np.array(loss), np.array(ref), rtol=5e-3, atol=1e-4)

    print("KERNEL_OK")
</pallas_src>

<mosaic_0001>
module attributes {stable_mosaic.version = 11 : i64} {
  func.func @_r2rei_kernel(%arg0: i32, %arg1: i32, %arg2: memref<1x8x128xf32, #tpu.memory_space<vmem>>, %arg3: memref<1x8x128xf32, #tpu.memory_space<vmem>>, %arg4: memref<1x8x128xf32, #tpu.memory_space<vmem>>, %arg5: memref<1x8x128xf32, #tpu.memory_space<vmem>>, %arg6: memref<8x8xf32, #tpu.memory_space<vmem>>, %arg7: memref<16x8xf32, #tpu.memory_space<vmem>>, %arg8: memref<16x8xf32, #tpu.memory_space<vmem>>, %arg9: memref<1x8x128xf32, #tpu.memory_space<vmem>>, %arg10: memref<8x128xf32, #tpu.memory_space<vmem>>, %arg11: memref<16x128xf32, #tpu.memory_space<vmem>>) attributes {dimension_semantics = [#tpu.dimension_semantics<parallel>, #tpu.dimension_semantics<arbitrary>], iteration_bounds = array<i64: 2, 1>, scalar_prefetch = 0 : i64, scratch_operands = 2 : i64, tpu.core_type = #tpu.core_type<tc>, window_params = [{transform_indices = @transform_0, window_bounds = array<i64: 1, 8, 128>}, {transform_indices = @transform_1, window_bounds = array<i64: 1, 8, 128>}, {transform_indices = @transform_2, window_bounds = array<i64: 1, 8, 128>}, {transform_indices = @transform_3, window_bounds = array<i64: 1, 8, 128>}, {pipeline_mode = #tpu.pipeline_mode<synchronous>, transform_indices = @transform_4, window_bounds = array<i64: 8, 8>}, {pipeline_mode = #tpu.pipeline_mode<synchronous>, transform_indices = @transform_5, window_bounds = array<i64: 16, 8>}, {pipeline_mode = #tpu.pipeline_mode<synchronous>, transform_indices = @transform_6, window_bounds = array<i64: 16, 8>}, {transform_indices = @transform_7, window_bounds = array<i64: 1, 8, 128>}]} {
    %c0 = arith.constant 0 : index
    %c0_0 = arith.constant 0 : index
    %c0_1 = arith.constant 0 : index
    %0 = vector.load %arg2[%c0, %c0_0, %c0_1] : memref<1x8x128xf32, #tpu.memory_space<vmem>>, vector<1x8x128xf32>
    %1 = vector.shape_cast %0 : vector<1x8x128xf32> to vector<8x128xf32>
    %c0_2 = arith.constant 0 : index
    %c0_3 = arith.constant 0 : index
    %c0_4 = arith.constant 0 : index
    %2 = vector.load %arg3[%c0_2, %c0_3, %c0_4] : memref<1x8x128xf32, #tpu.memory_space<vmem>>, vector<1x8x128xf32>
    %3 = vector.shape_cast %2 : vector<1x8x128xf32> to vector<8x128xf32>
    %c0_5 = arith.constant 0 : index
    %c0_6 = arith.constant 0 : index
    %c0_7 = arith.constant 0 : index
    %4 = vector.load %arg4[%c0_5, %c0_6, %c0_7] : memref<1x8x128xf32, #tpu.memory_space<vmem>>, vector<1x8x128xf32>
    %5 = vector.shape_cast %4 : vector<1x8x128xf32> to vector<8x128xf32>
    %c0_8 = arith.constant 0 : index
    %c0_9 = arith.constant 0 : index
    %c0_10 = arith.constant 0 : index
    %6 = vector.load %arg5[%c0_8, %c0_9, %c0_10] : memref<1x8x128xf32, #tpu.memory_space<vmem>>, vector<1x8x128xf32>
    %7 = vector.shape_cast %6 : vector<1x8x128xf32> to vector<8x128xf32>
    %cst = arith.constant 5.000000e-02 : f32
    %8 = vector.broadcast %cst : f32 to vector<8x128xf32>
    %9 = arith.mulf %8, %3 : vector<8x128xf32>
    %10 = arith.addf %1, %9 : vector<8x128xf32>
    %cst_11 = arith.constant 2.000000e-01 : f32
    %11 = vector.broadcast %cst_11 : f32 to vector<8x128xf32>
    %12 = arith.mulf %11, %3 : vector<8x128xf32>
    %13 = arith.subf %1, %12 : vector<8x128xf32>
    %c0_12 = arith.constant 0 : index
    %c0_13 = arith.constant 0 : index
    %14 = vector.load %arg6[%c0_12, %c0_13] : memref<8x8xf32, #tpu.memory_space<vmem>>, vector<8x8xf32>
    %cst_14 = arith.constant dense<0.000000e+00> : vector<8x128xf32>
    %15 = tpu.matmul %14, %10, %cst_14 {dimension_numbers = #tpu.dot_dimension_numbers<[1], [0], [0], [1], [0, 0, 1, 1], [], []>} : vector<8x8xf32>, vector<8x128xf32>, vector<8x128xf32> -> vector<8x128xf32>
    %16 = arith.subf %15, %13 : vector<8x128xf32>
    %cst_15 = arith.constant 5.000000e-02 : f32
    %17 = vector.broadcast %cst_15 : f32 to vector<8x128xf32>
    %18 = arith.mulf %17, %5 : vector<8x128xf32>
    %19 = arith.addf %1, %18 : vector<8x128xf32>
    %c0_16 = arith.constant 0 : index
    %c0_17 = arith.constant 0 : index
    %20 = vector.load %arg7[%c0_16, %c0_17] : memref<16x8xf32, #tpu.memory_space<vmem>>, vector<16x8xf32>
    %cst_18 = arith.constant dense<0.000000e+00> : vector<16x128xf32>
    %21 = tpu.matmul %20, %19, %cst_18 {dimension_numbers = #tpu.dot_dimension_numbers<[1], [0], [0], [1], [0, 0, 1, 1], [], []>} : vector<16x8xf32>, vector<8x128xf32>, vector<16x128xf32> -> vector<16x128xf32>
    %c0_19 = arith.constant 0 : index
    %c0_20 = arith.constant 0 : index
    %22 = vector.load %arg8[%c0_19, %c0_20] : memref<16x8xf32, #tpu.memory_space<vmem>>, vector<16x8xf32>
    %cst_21 = arith.constant dense<0.000000e+00> : vector<16x128xf32>
    %23 = tpu.matmul %22, %7, %cst_21 {dimension_numbers = #tpu.dot_dimension_numbers<[1], [0], [0], [1], [0, 0, 1, 1], [], []>} : vector<16x8xf32>, vector<8x128xf32>, vector<16x128xf32> -> vector<16x128xf32>
    %24 = arith.addf %21, %23 : vector<16x128xf32>
    %c0_i32 = arith.constant 0 : i32
    %25 = arith.cmpi eq, %arg1, %c0_i32 : i32
    %26 = arith.extui %25 : i1 to i32
    %c0_i32_22 = arith.constant 0 : i32
    %27 = arith.cmpi ne, %26, %c0_i32_22 : i32
    scf.if %27 {
      %cst_33 = arith.constant 0.000000e+00 : f32
      %39 = vector.broadcast %cst_33 : f32 to vector<8x128xf32>
      %c0_34 = arith.constant 0 : index
      %c0_35 = arith.constant 0 : index
      %40 = vector.load %arg10[%c0_34, %c0_35] : memref<8x128xf32, #tpu.memory_space<vmem>>, vector<8x128xf32>
      tpu.vector_store %arg10[%c0_34, %c0_35], %39 {strides = array<i32>} : memref<8x128xf32, #tpu.memory_space<vmem>>, vector<8x128xf32>,
      %cst_36 = arith.constant 0.000000e+00 : f32
      %41 = vector.broadcast %cst_36 : f32 to vector<16x128xf32>
      %c0_37 = arith.constant 0 : index
      %c0_38 = arith.constant 0 : index
      %42 = vector.load %arg11[%c0_37, %c0_38] : memref<16x128xf32, #tpu.memory_space<vmem>>, vector<16x128xf32>
      tpu.vector_store %arg11[%c0_37, %c0_38], %41 {strides = array<i32>} : memref<16x128xf32, #tpu.memory_space<vmem>>, vector<16x128xf32>,
    } else {
    }
    %c0_23 = arith.constant 0 : index
    %c0_24 = arith.constant 0 : index
    %28 = vector.load %arg10[%c0_23, %c0_24] : memref<8x128xf32, #tpu.memory_space<vmem>>, vector<8x128xf32>
    %29 = arith.mulf %16, %16 : vector<8x128xf32>
    %30 = arith.addf %28, %29 : vector<8x128xf32>
    %c0_25 = arith.constant 0 : index
    %c0_26 = arith.constant 0 : index
    %31 = vector.load %arg10[%c0_25, %c0_26] : memref<8x128xf32, #tpu.memory_space<vmem>>, vector<8x128xf32>
    tpu.vector_store %arg10[%c0_25, %c0_26], %30 {strides = array<i32>} : memref<8x128xf32, #tpu.memory_space<vmem>>, vector<8x128xf32>,
    %c0_27 = arith.constant 0 : index
    %c0_28 = arith.constant 0 : index
    %32 = vector.load %arg11[%c0_27, %c0_28] : memref<16x128xf32, #tpu.memory_space<vmem>>, vector<16x128xf32>
    %33 = arith.mulf %24, %24 : vector<16x128xf32>
    %34 = arith.addf %32, %33 : vector<16x128xf32>
    %c0_29 = arith.constant 0 : index
    %c0_30 = arith.constant 0 : index
    %35 = vector.load %arg11[%c0_29, %c0_30] : memref<16x128xf32, #tpu.memory_space<vmem>>, vector<16x128xf32>
    tpu.vector_store %arg11[%c0_29, %c0_30], %34 {strides = array<i32>} : memref<16x128xf32, #tpu.memory_space<vmem>>, vector<16x128xf32>,
    %c0_i32_31 = arith.constant 0 : i32
    %36 = arith.cmpi eq, %arg1, %c0_i32_31 : i32
    %37 = arith.extui %36 : i1 to i32
    %c0_i32_32 = arith.constant 0 : i32
    %38 = arith.cmpi ne, %37, %c0_i32_32 : i32
    scf.if %38 {
      %c0_33 = arith.constant 0 : index
      %c0_34 = arith.constant 0 : index
      %39 = vector.load %arg10[%c0_33, %c0_34] : memref<8x128xf32, #tpu.memory_space<vmem>>, vector<8x128xf32>
      %40 = vector.shape_cast %39 : vector<8x128xf32> to vector<1x8x128xf32>
      %cst_35 = arith.constant dense<0.000000e+00> : vector<1xf32>
      %41 = vector.multi_reduction <add>, %40, %cst_35 [1, 2] : vector<1x8x128xf32> to vector<1xf32>
      %42 = vector.shape_cast %41 : vector<1xf32> to vector<1x1x1xf32>
      %43 = vector.extract %42[0, 0, 0] : f32 from vector<1x1x1xf32>
      %c0_36 = arith.constant 0 : index
      %c0_37 = arith.constant 0 : index
      %44 = vector.load %arg11[%c0_36, %c0_37] : memref<16x128xf32, #tpu.memory_space<vmem>>, vector<16x128xf32>
      %45 = vector.shape_cast %44 : vector<16x128xf32> to vector<1x16x128xf32>
      %cst_38 = arith.constant dense<0.000000e+00> : vector<1xf32>
      %46 = vector.multi_reduction <add>, %45, %cst_38 [1, 2] : vector<1x16x128xf32> to vector<1xf32>
      %47 = vector.shape_cast %46 : vector<1xf32> to vector<1x1x1xf32>
      %48 = vector.extract %47[0, 0, 0] : f32 from vector<1x1x1xf32>
      %49 = vector.broadcast %43 : f32 to vector<1x128xf32>
      %50 = vector.broadcast %48 : f32 to vector<1x128xf32>
      %cst_39 = arith.constant 0.000000e+00 : f32
      %51 = vector.broadcast %cst_39 : f32 to vector<6x128xf32>
      %52 = tpu.concatenate %49, %50, %51 in 0 : vector<1x128xf32>, vector<1x128xf32>, vector<6x128xf32> -> vector<8x128xf32>
      %c0_40 = arith.constant 0 : index
      %c0_41 = arith.constant 0 : index
      %c0_42 = arith.constant 0 : index
      %53 = vector.load %arg9[%c0_40, %c0_41, %c0_42] : memref<1x8x128xf32, #tpu.memory_space<vmem>>, vector<1x8x128xf32>
      %54 = vector.shape_cast %53 : vector<1x8x128xf32> to vector<8x128xf32>
      %55 = vector.shape_cast %52 : vector<8x128xf32> to vector<1x8x128xf32>
      tpu.vector_store %arg9[%c0_40, %c0_41, %c0_42], %55 {strides = array<i32>} : memref<1x8x128xf32, #tpu.memory_space<vmem>>, vector<1x8x128xf32>,
    } else {
    }
    return
  }
  func.func @transform_0(%arg0: i32, %arg1: i32) -> (i32, i32, i32) {
    %c0_i32 = arith.constant 0 : i32
    %c0_i32_0 = arith.constant 0 : i32
    return %arg0, %c0_i32, %arg1 : i32, i32, i32
  }
  func.func @transform_1(%arg0: i32, %arg1: i32) -> (i32, i32, i32) {
    %c0_i32 = arith.constant 0 : i32
    %c0_i32_0 = arith.constant 0 : i32
    return %arg0, %c0_i32, %arg1 : i32, i32, i32
  }
  func.func @transform_2(%arg0: i32, %arg1: i32) -> (i32, i32, i32) {
    %c0_i32 = arith.constant 0 : i32
    %c0_i32_0 = arith.constant 0 : i32
    return %arg0, %c0_i32, %arg1 : i32, i32, i32
  }
  func.func @transform_3(%arg0: i32, %arg1: i32) -> (i32, i32, i32) {
    %c0_i32 = arith.constant 0 : i32
    %c0_i32_0 = arith.constant 0 : i32
    return %arg0, %c0_i32, %arg1 : i32, i32, i32
  }
  func.func @transform_4(%arg0: i32, %arg1: i32) -> (i32, i32) {
    %c0_i32 = arith.constant 0 : i32
    %c0_i32_0 = arith.constant 0 : i32
    %c0_i32_1 = arith.constant 0 : i32
    return %c0_i32, %c0_i32_0 : i32, i32
  }
  func.func @transform_5(%arg0: i32, %arg1: i32) -> (i32, i32) {
    %c0_i32 = arith.constant 0 : i32
    %c0_i32_0 = arith.constant 0 : i32
    %c0_i32_1 = arith.constant 0 : i32
    return %c0_i32, %c0_i32_0 : i32, i32
  }
  func.func @transform_6(%arg0: i32, %arg1: i32) -> (i32, i32) {
    %c0_i32 = arith.constant 0 : i32
    %c0_i32_0 = arith.constant 0 : i32
    %c0_i32_1 = arith.constant 0 : i32
    return %c0_i32, %c0_i32_0 : i32, i32
  }
  func.func @transform_7(%arg0: i32, %arg1: i32) -> (i32, i32, i32) {
    %c0_i32 = arith.constant 0 : i32
    %c0_i32_0 = arith.constant 0 : i32
    %c0_i32_1 = arith.constant 0 : i32
    return %arg0, %c0_i32, %c0_i32_0 : i32, i32, i32
  }
}

</mosaic_0001>

<bundles_post_ra>
// kernel: tpu_custom_call.1
= control target key start
LH: loop header
LB: loop body
LE: loop exit
PB: predicated region body
PF: predicated region fallthrough
CT: control target
= control target key end

     0   :  { %s1423_s0 = inlined_call_operand.vmem [shape: f32[2,8,128], index: 0, kind: input, shape index: {}]   ;;  %s1424_s1 = inlined_call_operand.vmem [shape: f32[2,8,128], index: 1, kind: input, shape index: {}]   ;;  %s1425_s2 = inlined_call_operand.vmem [shape: f32[2,8,128], index: 2, kind: input, shape index: {}]   ;;  %s1426_s3 = inlined_call_operand.hbm [shape: f32[2,8,128], index: 3, kind: input, shape index: {}]   ;;  %s1427_s4 = inlined_call_operand.hbm [shape: f32[8,8], index: 4, kind: input, shape index: {}]   ;;  %s1428_s5 = inlined_call_operand.vmem [shape: f32[16,8], index: 5, kind: input, shape index: {}]   ;;  %s1429_s6 = inlined_call_operand.vmem [shape: f32[16,8], index: 6, kind: input, shape index: {}]   ;;  %s1430_s7 = inlined_call_operand.hbm [shape: f32[2,8,128], index: 7, kind: output, shape index: {}]  }
   0x1   :  { %1437 = sst [smem:[#allocation14_spill]] %s1426_s3 }
   0x2   :  { %1438 = sst [smem:[#allocation15_spill]] %s1427_s4 }
   0x3   :  { %12 = vsyncpa [#allocation5], 0 }
   0x4   :  { %14 = vsyncpa [#allocation5 + $0x1], 0 }
   0x5   :  { %15 = vsyncpa [#allocation8], 0 }
   0x6   :  { %16 = vsyncpa [#allocation6], 0 }
   0x7   :  { %18 = vsyncpa [#allocation6 + $0x1], 0  ;;  %s1175_s24 = smov 0   ;;  %s1177_s25 = smov 0  }
   0x8   :  { %s1179_s26 = smov 0   ;;  %s1181_s27 = smov 0  }
   0x9   :  { %s1183_s28 = smov 0   ;;  %s1185_s29 = smov 0  }
   0xa LB: > { %s857_s30 = sadd.s32 4294967295, %s1128_s29   ;;  %s858_s8 = sadd.s32 4294967294, %s1128_s29   ;;  %s1128_s29 = sphi %s1185_s29, %s24_s29   ;;  %s1124_s28 = sphi %s1183_s28, %s1465_s28   ;;  %s1120_s27 = sphi %s1181_s27, %s1464_s27   ;;  %s1116_s26 = sphi %s1179_s26, %s1463_s26   ;;  %s1112_s25 = sphi %s1177_s25, %s1462_s25   ;;  %s1108_s24 = sphi %s1175_s24, %s1461_s24  }
   0xb   : > { %p142_p0 = scmp.ne.s32.totalorder %s1112_s25, %s1108_s24  ;;  %p1209_p1 = scmp.eq.s32.totalorder %s857_s30, 0 }
   0xc   : > { %p1213_p2 = scmp.eq.s32.totalorder %s857_s30, 1  ;;  %p235_p3 = scmp.eq.s32.totalorder %s858_s8, 1 }
   0xd   : > { %s1439_s9 = scalar_select %p1209_p1, 1, 0 }
   0xe   : > { %s1440_s10 = scalar_select %p1213_p2, 1, 0 }
   0xf   : > { %p1219_p4 = por %p1209_p1, %p142_p0  ;;  %p859_p5 = scmp.ge.s32.totalorder %s1128_s29, 1 }
  0x10   : > { %p1224_p6 = por %p235_p3, %p142_p0  ;;  %p242_p7 = scmp.lt.s32.totalorder %s1128_s29, 3 }
  0x11   : > { %s1441_s11 = scalar_select %p1219_p4, 1, 0 }
  0x12   : > { %s1442_s12 = scalar_select %p1224_p6, 1, 0 }
  0x13   : > { %p1229_p8 = pnand %p859_p5, %p242_p7  ;;  %s1130_s14 = smov [#allocation7]  }
  0x14   : > { %s255_s15 = sshll.u32 %s1130_s14, 4  ;;  %s36_s17 = sadd.s32 1, %s1124_s28  ;;  %s256_s15 = int_to_ptr.vmem [resolvable:$true] %s255_s15 }
  0x15   : > { %s1443_s13 = scalar_select %p1229_p8, 1, 0 }
  0x16   : > { %p917_p10 = pneg %p1229_p8  ;;  %p1244_p12 = scmp.ge.s32.totalorder %s36_s17, 2 }
  0x17   : > { %s1446_s4 = sld [smem:[#allocation15_spill]] }
  0x18   : > { %p1238_p11 = pnand %p917_p10, %p1209_p1 }
  0x19   : > { %s1445_s19 = scalar_select %p1244_p12, 1, 0 }
  0x1a   : > { %p986_p0 = pneg %p1238_p11 }
  0x1d   : > { %s984_s22 = scalar_lea.hbm %s1446_s4, 128 }
  0x1e   : > { %p985_p13 = scmp.ne.s32.totalorder %s1446_s4, %s984_s22  ;;  %p991_p7 = scmp.lt.u32.totalorder %s984_s22, %s1446_s4 }
  0x20   : > { %p987_p3 = pnand %p986_p0, %p985_p13 }
  0x22   : > { %p988_p5 = pneg %p987_p3 }
  0x24   : > { %p993_p10 = pnand %p991_p7, %p988_p5 }
  0x26   : > { %996 = shalt.err (!%p993_p10)
}
  0x27   : > { %s997_s18 = scalar_lea.vmem %s256_s15, 128  ;;  %p1005_p4 = scmp.lt.s32.totalorder %s256_s15, %s256_s15 }
  0x28   : > { %p998_p9 = scmp.ne.s32.totalorder %s256_s15, %s997_s18  ;;  %p1006_p8 = scmp.lt.s32.totalorder %s997_s18, %s997_s18 }
  0x2a   : > { %p1000_p6 = pnand %p998_p9, %p986_p0  ;;  %p1007_p2 = por %p1006_p8, %p1005_p4 }
  0x2c   : > { %p1001_p1 = pneg %p1000_p6 }
  0x2e   : > { %p1008_p12 = pnand %p1007_p2, %p1001_p1 }
  0x30   : > { %1011 = shalt.err (!%p1008_p12)
}
  0x31   : > { %920 = dma.hbm_to_vmem [thread:$0]  (!%p1238_p11), %s1446_s4, 128, %s256_s15, [#allocation8]  }
  0x32   : > { %p1447_p4 = scmp.ne.s32.totalorder %s1445_s19, 0  ;;  %p136_p1 = scmp.ne.s32.totalorder %s1116_s26, %s1112_s25 }
  0x33   : > { %p137_p2 = scmp.eq.s32.totalorder %s1128_s29, 0  ;;  %p930_p6 = scmp.lt.s32.totalorder %s1128_s29, 2 }
  0x34   : > { %s1467_s17 = smov (%p1447_p4, %s36_s17), 0  ;;  %p1449_p12 = scmp.ne.s32.totalorder %s1440_s10, 0 }
  0x35   : > { %1448 = sst [smem:[#allocation13_spill]] %s1467_s17  ;;  %s124_s16 = ssub.s32 %s1124_s28, %s1467_s17 }
  0x36   : > { %p127_p8 = scmp.eq.s32.totalorder %s124_s16, 0  ;;  %p138_p9 = por %p137_p2, %p136_p1 }
  0x37   : > { %p1276_p13 = por %p1449_p12, %p136_p1  ;;  %s302_s22 = sand.u32 1, %s1116_s26  }
  0x38   : > { %s1451_s23 = sadd.s32 1, %s1116_s26  ;;  %s862_s15 = sshll.u32 %s302_s22, 3 }
  0x39   : > { %s1284_s30 = scalar_select %p127_p8, %s1116_s26, %s1451_s23  }
  0x3a   : > { %s863_s19 = sshll.u32 %s1124_s28, 7  ;;  %s1452_s3 = sld [smem:[#allocation14_spill]] }
  0x3b   : > { %s306_s10 = scalar_lea.vmem [#allocation4], %s862_s15  ;;  %p1294_p11 = pnand %p930_p6, %p138_p9 }
  0x3c   : > { %s314_s21 = sshll.u32 %s306_s10, 4  ;;  %s303_s23 = scalar_lea.sflag [#allocation5], %s302_s22  ;;  %s1292_s21 = int_to_ptr.vmem [resolvable:$true] %s314_s21 }
  0x3d   : > { %p1014_p3 = pneg %p1294_p11 }
  0x40   : > { %s1290_s20 = scalar_lea.hbm %s1452_s3, %s863_s19  ;;  %s1017_s8 = scalar_lea.hbm %s1452_s3, 256 }
  0x41   : > { %s1012_s4 = scalar_lea.hbm %s1290_s20, 128  ;;  %p1018_p10 = scmp.lt.u32.totalorder %s1290_s20, %s1452_s3 }
  0x42   : > { %p1013_p0 = scmp.ne.s32.totalorder %s1290_s20, %s1012_s4  ;;  %p1019_p4 = scmp.lt.u32.totalorder %s1017_s8, %s1012_s4 }
  0x43   : > { %p1021_p2 = scmp.lt.u32.totalorder %s1012_s4, %s1290_s20 }
  0x44   : > { %p1015_p5 = pnand %p1014_p3, %p1013_p0  ;;  %p1020_p1 = por %p1019_p4, %p1018_p10 }
  0x46   : > { %p1016_p7 = pneg %p1015_p5  ;;  %p1022_p6 = por %p1021_p2, %p1020_p1 }
  0x48   : > { %p1023_p8 = pnand %p1022_p6, %p1016_p7 }
  0x4a   : > { %1026 = shalt.err (!%p1023_p8)
}
  0x4b   : > { %s1027_s22 = scalar_lea.vmem %s1292_s21, 128  ;;  %s1131_s19 = smov [#allocation4]  }
  0x4c   : > { %p1028_p9 = scmp.ne.s32.totalorder %s1292_s21, %s1027_s22  ;;  %s1032_s15 = sshll.u32 %s1131_s19, 4  ;;  %s1033_s15 = int_to_ptr.vmem [resolvable:$false] %s1032_s15 }
  0x4d   : > { %s1034_s14 = scalar_lea.vmem %s1033_s15, 256  ;;  %p1035_p5 = scmp.lt.s32.totalorder %s1292_s21, %s1033_s15 }
  0x4e   : > { %p1030_p12 = pnand %p1028_p9, %p1014_p3  ;;  %p1036_p10 = scmp.lt.s32.totalorder %s1034_s14, %s1027_s22 }
  0x50   : > { %p1031_p0 = pneg %p1030_p12  ;;  %p1037_p4 = por %p1036_p10, %p1035_p5 }
  0x52   : > { %p1038_p1 = pnand %p1037_p4, %p1031_p0 }
  0x54   : > { %1041 = shalt.err (!%p1038_p1)
}
  0x55   : > { %924 = dma.hbm_to_vmem [thread:$0]  (!%p1294_p11), %s1290_s20, 128, %s1292_s21, %s303_s23  }
  0x56   : > { %p1454_p7 = scmp.ne.s32.totalorder %s1443_s13, 0 }
  0x57   : > { %s1326_s4 = sand.u32 (!%p1454_p7), 1, %s1112_s25   ;;  %p1455_p3 = scmp.ne.s32.totalorder (!%p1454_p7), %s1441_s11, 0 }
  0x58   : > { %323 = sbr.rel (%p1454_p7) target bundleno = 553 (0x229), region = 48  ;;  %s1435_s8 = sshll.u32 (!%p1454_p7), %s1326_s4, 3 }
  0x59   : > { %s326_s10 = scalar_lea.sflag (!%p1454_p7), [#allocation5], %s1326_s4  ;;  %s329_s22 = scalar_lea.vmem (!%p1454_p7), [#allocation4], %s1435_s8 }
  0x5f   : > { %1095 = dma.done.wait (%p1455_p3), %s326_s10, 128  }
  0x60   : > { %1097 = vsyncadd (%p1455_p3), %s326_s10, 4294967168  ;;  %p1456_p11 = scmp.ne.s32.totalorder %s1439_s9, 0 }
  0x62   : > { %1099 = dma.done.wait (%p1456_p11), [#allocation8], 128  }
  0x63   : > { %1101 = vsyncadd (%p1456_p11), [#allocation8], 4294967168  ;;  %p385_p2 = scmp.lt.s32.totalorder %s1120_s27, 1  ;;  %v1132_v0 = vmov 0.0   ;;  %vm1133_vm0 = vmmov 0   ;;  %vm415_vm1 = vcmask 64512  }
  0x64   : > { %888 = vmatprep.subr.mxu0 %v1132_v0  ;;  %890 = vmatprep.mubr.msk.f32.mxu0 %vm1133_vm0, %v1132_v0  ;;  %v409_v1 = vld [vmem:[%s329_s22] sm:$0xff]  ;;  %v414_v12 = vld [vmem:[#allocation7] sm:$0xff]  ;;  %vm704_vm2 = vcmask 1040384   ;;  %s877_s22 = sshll.u32 %s1120_s27, 7  ;;  %s1457_s16 = sshll.u32 %s1326_s4, 3  ;;  %vm706_vm3 = vcmask 1041408  }
  0x65   : > { %s386_s13 = scalar_select %p385_p2, %s1120_s27, 1  ;;  %v494_v2 = vld [vmem:[%s1429_s6] sm:$0xff]  ;;  %v495_v3 = vld [vmem:[%s1429_s6 + $0x8] sm:$0xff]  ;;  %893 = vmatprep.subr.mxu1 %v409_v1 }
  0x66   : > { %895 = vmatprep.mubr.msk.f32.mxu1 %vm415_vm1, %v494_v2  ;;  %894 = vmatpush3.msra.mxu1 %v409_v1  ;;  %v492_v9 = vld [vmem:[%s1428_s5] sm:$0xff]  ;;  %v493_v13 = vld [vmem:[%s1428_s5 + $0x8] sm:$0xff]  ;;  %s1374_s14 = scalar_lea.hbm %s1430_s7, %s877_s22  ;;  %s710_s27 = scalar_lea.sflag [#allocation6], %s1326_s4 }
  0x67   : > { %s868_s20 = sshll.u32 %s386_s13, 3  ;;  %896 = vmatmul.mubr.msk.f32.vlgmr.msra.gmra.mrb[0].mxu1 %vm415_vm1, %v495_v3  ;;  %s1134_s13 = smov [#allocation9]  }
  0x68   : > { %s391_s11 = scalar_lea.vmem %s1423_s0, %s868_s20  ;;  %s398_s15 = scalar_lea.vmem %s1424_s1, %s868_s20  ;;  %900 = vmatprep.mubr.msk.f32.mxu1 %vm415_vm1, %v492_v9 }
  0x69   : > { %s405_s10 = scalar_lea.vmem %s1425_s2, %s868_s20  ;;  %v406_v4 = vld [vmem:[%s391_s11] sm:$0xff]  ;;  %s384_s11 = scalar_lea.vmem [#allocation9], %s1457_s16 }
  0x6a   : > { %v407_v5 = vld [vmem:[%s398_s15] sm:$0xff]  ;;  %s723_s23 = sshll.u32 %s384_s11, 4  ;;  %s1046_s21 = sshll.u32 %s1134_s13, 4  ;;  %s1376_s23 = int_to_ptr.vmem [resolvable:$true] %s723_s23  ;;  %s1047_s21 = int_to_ptr.vmem [resolvable:$false] %s1046_s21 }
  0x6b   : > { %v408_v6 = vld [vmem:[%s405_s10] sm:$0xff]  ;;  %v410_v7 = vmul.f32 0.05, %v407_v5  ;;  %v412_v14 = vmul.f32 0.2, %v407_v5  ;;  %s1042_s10 = scalar_lea.vmem %s1376_s23, 128  ;;  %p1049_p12 = scmp.lt.s32.totalorder %s1376_s23, %s1047_s21 }
  0x6c   : > { %v490_v8 = vmul.f32 0.05, %v408_v6  ;;  %p1043_p6 = scmp.ne.s32.totalorder %s1376_s23, %s1042_s10  ;;  %s1048_s20 = scalar_lea.vmem %s1047_s21, 256 }
  0x6d   : > { %v411_v10 = vadd.f32 %v410_v7, %v406_v4  ;;  %v413_v15 = vsub.f32 %v406_v4, %v412_v14  ;;  %p1050_p0 = scmp.lt.s32.totalorder %s1048_s20, %s1042_s10 }
  0x6e   : > { %v491_v11 = vadd.f32 %v490_v8, %v406_v4  ;;  %p1044_p8 = pnand %p1043_p6, %p1276_p13 }
  0x6f   : > { %889 = vmatpush3.msra.mxu0 %v411_v10  ;;  %p1051_p5 = por %p1050_p0, %p1049_p12 }
  0x70   : > { %898 = vmatprep.subr.mxu1 %v491_v11  ;;  %891 = vmatmul.mubr.msk.f32.vlgmr.msra.gmra.mrb[0].mxu0 %vm415_vm1, %v414_v12  ;;  %p1045_p9 = pneg %p1044_p8 }
  0x71   : > { %899 = vmatpush3.msra.mxu1 %v491_v11 }
  0x72   : > { %901 = vmatmul.mubr.msk.f32.vlgmr.msra.gmra.mrb[0].mxu1 %vm415_vm1, %v493_v13  ;;  %p1052_p10 = pnand %p1051_p5, %p1045_p9 }
 0x143   : > { %v485_v16 = vpop.f32.mrb[0].mxu0 }
 0x144   : > { %v489_v17 = vsub.f32 %v485_v16, %v413_v15  ;;  %v892_v18 = vpop.f32.mrb[1].mxu0 }
 0x145   : > { %v902_v20 = vpop.f32.mrb[0].mxu1 }
 0x146   : > { %v666_v19 = vmul.f32 %v489_v17, %v489_v17  ;;  %v672_v21 = vmul.f32 %v902_v20, %v902_v20  ;;  %v649_v22 = vpop.f32.mrb[1].mxu1 }
 0x147   : > { %v671_v23 = vmul.f32 %v649_v22, %v649_v22 }
 0x148   : > { %681 = vadd.xlane.f32.xlu0 %v666_v19 }
 0x149   : > { %v692_v24 = vadd.f32 %v672_v21, %v671_v23 }
 0x14c   : > { %693 = vadd.xlane.f32.xlu0 %v692_v24 }
 0x1d5   : > { %v682_v25 = vpop.xlane.xlu0 %681 }
 0x1d6   : > { %v683_v26 = vrot.slane %v682_v25, 4 }
 0x1d8   : > { %v684_v27 = vadd.f32 %v683_v26, %v682_v25 }
 0x1d9   : > { %v694_v29 = vpop.xlane.xlu0 %693 }
 0x1da   : > { %v685_v28 = vrot.slane %v684_v27, 2  ;;  %v695_v30 = vrot.slane %v694_v29, 4 }
 0x1dc   : > { %v686_v31 = vadd.f32 %v685_v28, %v684_v27  ;;  %v696_v32 = vadd.f32 %v695_v30, %v694_v29 }
 0x1de   : > { %v687_v33 = vrot.slane %v686_v31, 1  ;;  %v697_v34 = vrot.slane %v696_v32, 2 }
 0x1e0   : > { %v688_v35 = vadd.f32 %v687_v33, %v686_v31  ;;  %v698_v36 = vadd.f32 %v697_v34, %v696_v32 }
 0x1e2   : > { %905 = vpush %v688_v35  ;;  %v699_v37 = vrot.slane %v698_v36, 1 }
 0x1e4   : > { %v700_v38 = vadd.f32 %v699_v37, %v698_v36 }
 0x1e6   : > { %907 = vpush %v700_v38 }
 0x213   : > { %s906_s8 = spop %905 }
 0x214   : > { %v702_v39 = vstv %s906_s8 }
 0x217   : > { %s908_s19 = spop %907 }
 0x218   : > { %v703_v40 = vstv %s908_s19 }
 0x219   : > { %v705_v41 = vsel %vm704_vm2, %v702_v39, %v703_v40 }
 0x21a   : > { %v707_v42 = vsel %vm706_vm3, %v705_v41, 0.0 }
 0x21b   : > { %708 = vst [vmem:[%s384_s11] sm:$0xff] %v707_v42 }
 0x21c   : > { %1055 = shalt.err (!%p1052_p10)
}
 0x21d   : > { %s1056_s4 = scalar_lea.hbm %s1374_s14, 128  ;;  %s1060_s8 = scalar_lea.hbm %s1430_s7, 256 }
 0x21e   : > { %p1057_p4 = scmp.ne.s32.totalorder %s1374_s14, %s1056_s4  ;;  %p1061_p3 = scmp.lt.u32.totalorder %s1374_s14, %s1430_s7 }
 0x21f   : > { %p1062_p11 = scmp.lt.u32.totalorder %s1060_s8, %s1056_s4  ;;  %p1064_p6 = scmp.lt.u32.totalorder %s1056_s4, %s1374_s14 }
 0x220   : > { %p1058_p1 = pnand %p1057_p4, %p1276_p13 }
 0x221   : > { %p1063_p2 = por %p1062_p11, %p1061_p3 }
 0x222   : > { %p1059_p7 = pneg %p1058_p1 }
 0x223   : > { %p1065_p8 = por %p1064_p6, %p1063_p2 }
 0x225   : > { %p1066_p9 = pnand %p1065_p8, %p1059_p7 }
 0x227   : > { %1069 = shalt.err (!%p1066_p9)
}
 0x228   : > { %915 = dma.vmem_to_hbm [thread:$0]  (%p1276_p13), %s1376_s23, 128, %s1374_s14, %s710_s27  }
 0x229 PF: > { %s735_s11 = sand.u32 1, %s1108_s24   ;;  %p1458_p12 = scmp.ne.s32.totalorder %s1442_s12, 0 }
 0x22a   : > { %p1459_p0 = scmp.ge.s32.totalorder %s1128_s29, 2  ;;  %s736_s19 = scalar_lea.sflag [#allocation6], %s735_s11 }
 0x22c   : > { %p926_p5 = pnand %p1459_p0, %p1458_p12 }
 0x22e   : > { %1103 = dma.done.wait (!%p926_p5), %s736_s19, 128  }
 0x22f   : > { %1105 = vsyncadd (!%p926_p5), %s736_s19, 4294967168  ;;  %s24_s29 = sadd.s32 1, %s1128_s29   ;;  %s1460_s18 = sld [smem:[#allocation13_spill]] }
 0x230   : > { %p21_p10 = scmp.ge.s32.totalorder %s24_s29, 4   ;;  %s1461_s24 = smov %s1112_s25 }
 0x231   : > { %s1462_s25 = smov %s1116_s26  ;;  %s1463_s26 = smov %s1284_s30 }
 0x232   : > { %s1464_s27 = smov %s1124_s28  ;;  %23 = sbr.rel (!%p21_p10) target bundleno = 10 (0xa), region = 114 }
 0x235   : > { %s1465_s28 = smov %s1460_s18 }
 0x239   :  { %741 = vsyncpa [#allocation5], 1 }
 0x23a   :  { %743 = vsyncpa [#allocation5 + $0x1], 1 }
 0x23b   :  { %744 = vsyncpa [#allocation8], 1 }
 0x23c   :  { %745 = vsyncpa [#allocation6], 1 }
 0x23d   :  { %747 = vsyncpa [#allocation6 + $0x1], 1 }

</bundles_post_ra>
